<compile_context>
chip_gen: v5e
topology: v5e:2x2
jax: 0.10.0
libtpu: 0.0.40
codegen_flags: <defaults>
</compile_context>

<pallas_src>
import math
import jax
import jax.numpy as jnp
from jax import lax
from jax.experimental import pallas as pl
from jax.experimental.pallas import tpu as pltpu

LAMBDA_PARAM = 0.1
_INV_SQRT2 = 1.0 / math.sqrt(2.0)

_LANE = 128


def _block_bytes_and_vmem_limit():
    """Per-operand block bytes and scoped-VMEM override for the local TPU gen."""
    try:
        kind = jax.devices()[0].device_kind.lower()
    except Exception:
        kind = ""
    if "v7" in kind or "7x" in kind:
        # ~3.2 TB/s HBM: a 2 MiB in/out block finishes in ~1.3 us, so the fixed
        # ~0.35 us/step overhead is 20-30%; 4 MiB blocks cut that to ~10%.
        # 4 MiB x 2 operands x 2 buffers = 16 MiB; raise the scoped limit to
        # 48 MiB for intermediate headroom (physical VMEM is 64 MiB on v7x).
        return 4 * 1024 * 1024, 48 * 1024 * 1024
    if "v6" in kind:
        # Measured f32 elementwise roofline moves only ~85%->86% from 1->4 MiB
        # tiles; 4 MiB double-buffered (16 MiB) fits the 32 MiB default limit.
        return 4 * 1024 * 1024, None
    # v5e (and unknown): keep 2 MiB — 8 MiB double-buffered sits comfortably
    # under the 16 MiB default scoped limit; per-step overhead already <8%.
    return 2 * 1024 * 1024, None


def _loggelu_kernel(x_ref, o_ref):
    x = x_ref[...]
    xf = x.astype(jnp.float32)

    # lambda * sign(x) * log1p(|x|)  ==  copysign(lambda * log1p(|x|), x)
    # (log1p(|x|) >= 0, and both sides are exactly 0 at x == 0).
    lam_log = LAMBDA_PARAM * jnp.log1p(jnp.abs(xf))            # >= 0
    sign_bits = pltpu.bitcast(xf, jnp.uint32) & jnp.uint32(0x80000000)
    shift = pltpu.bitcast(
        pltpu.bitcast(lam_log, jnp.uint32) | sign_bits, jnp.float32
    )

    z = xf + shift
    # ndtr(z) = 0.5 * (1 + erf(z / sqrt(2)))  — kept erf-exact for numerics.
    # TODO(synk): if VALU-bound on v7x and accuracy spec is relaxed, offload
    # ndtr to the EUP via a tanh/sigmoid form.
    ndtr = 0.5 * (1.0 + lax.erf(z * _INV_SQRT2))
    o_ref[...] = (xf * ndtr).astype(o_ref.dtype)


def loggelu(x):
    """Applies LOGGELU elementwise. Accepts any shape (e.g. NCHW)."""
    orig_shape = x.shape
    orig_dtype = x.dtype
    n = x.size
    itemsize = jnp.dtype(orig_dtype).itemsize

    # Flatten to a lane-dense [rows, 128] slab.  Pad only to the 128-lane
    # boundary (< 128 tail elements); the (8,128) divisibility rule applies to
    # block_shape, not the array, and Pallas clips the ragged last row-block,
    # so no sublane rounding and no extra HBM pad/slice passes.
    rows = pl.cdiv(n, _LANE)
    padded_n = rows * _LANE

    x_flat = jnp.reshape(x, (-1,))
    needs_pad = padded_n != n
    if needs_pad:
        x_flat = jnp.pad(x_flat, (0, padded_n - n))
    x2d = jnp.reshape(x_flat, (rows, _LANE))

    block_bytes, vmem_limit = _block_bytes_and_vmem_limit()
    block_rows = max(8, (block_bytes // (_LANE * itemsize)) // 8 * 8)
    block_rows = min(block_rows, rows)          # full-array block if small
    grid = (pl.cdiv(rows, block_rows),)         # ragged last block is clipped

    cost = pl.CostEstimate(
        flops=30 * n,            # abs/log1p poly, adds, muls, erf poly
        transcendentals=2 * n,   # log1p + erf
        bytes_accessed=2 * n * itemsize,
    )

    out2d = pl.pallas_call(
        _loggelu_kernel,
        out_shape=jax.ShapeDtypeStruct((rows, _LANE), orig_dtype),
        grid_spec=pltpu.PrefetchScalarGridSpec(
            num_scalar_prefetch=0,
            grid=grid,
            in_specs=[pl.BlockSpec((block_rows, _LANE), lambda i: (i, 0))],
            out_specs=pl.BlockSpec((block_rows, _LANE), lambda i: (i, 0)),
        ),
        compiler_params=pltpu.CompilerParams(
            dimension_semantics=("parallel",),
            vmem_limit_bytes=vmem_limit,
        ),
        cost_estimate=cost,
    )(x2d)

    out_flat = jnp.reshape(out2d, (-1,))
    if needs_pad:
        out_flat = out_flat[:n]
    return jnp.reshape(out_flat, orig_shape)


def _loggelu_ref(x):
    xf = x.astype(jnp.float32)
    z = xf + LAMBDA_PARAM * jnp.sign(xf) * jnp.log1p(jnp.abs(xf))
    return (xf * 0.5 * (1.0 + lax.erf(z * _INV_SQRT2))).astype(x.dtype)


if __name__ == "__main__":
    key = jax.random.PRNGKey(0)
    x = jax.random.normal(key, (2, 4, 16, 16), dtype=jnp.float32)  # NCHW

    out = loggelu(x)
    out = jax.block_until_ready(out)

    ref = _loggelu_ref(x)
    assert out.shape == x.shape and out.dtype == x.dtype
    assert jnp.max(jnp.abs(out - ref)) < 1e-5

    print("KERNEL_OK")
</pallas_src>

<mosaic_0001>
module attributes {stable_mosaic.version = 11 : i64} {
  func.func @_loggelu_kernel(%arg0: i32, %arg1: memref<16x128xf32, #tpu.memory_space<vmem>>, %arg2: memref<16x128xf32, #tpu.memory_space<vmem>>) attributes {dimension_semantics = [#tpu.dimension_semantics<parallel>], iteration_bounds = array<i64: 1>, scalar_prefetch = 0 : i64, scratch_operands = 0 : i64, tpu.core_type = #tpu.core_type<tc>, window_params = [{transform_indices = @transform_0, window_bounds = array<i64: 16, 128>}, {transform_indices = @transform_1, window_bounds = array<i64: 16, 128>}]} {
    %c0 = arith.constant 0 : index
    %c0_0 = arith.constant 0 : index
    %0 = vector.load %arg1[%c0, %c0_0] : memref<16x128xf32, #tpu.memory_space<vmem>>, vector<16x128xf32>
    %1 = math.absf %0 : vector<16x128xf32>
    %2 = math.log1p %1 : vector<16x128xf32>
    %cst = arith.constant 1.000000e-01 : f32
    %3 = vector.broadcast %cst : f32 to vector<16x128xf32>
    %4 = arith.mulf %3, %2 : vector<16x128xf32>
    %5 = tpu.bitcast %0 : vector<16x128xf32> -> vector<16x128xi32>
    %c-2147483648_i32 = arith.constant -2147483648 : i32
    %6 = vector.broadcast %c-2147483648_i32 : i32 to vector<16x128xi32>
    %7 = arith.andi %5, %6 : vector<16x128xi32>
    %8 = tpu.bitcast %4 : vector<16x128xf32> -> vector<16x128xi32>
    %9 = arith.ori %8, %7 : vector<16x128xi32>
    %10 = tpu.bitcast %9 : vector<16x128xi32> -> vector<16x128xf32>
    %11 = arith.addf %0, %10 : vector<16x128xf32>
    %cst_1 = arith.constant 0.707106769 : f32
    %12 = vector.broadcast %cst_1 : f32 to vector<16x128xf32>
    %13 = arith.mulf %11, %12 : vector<16x128xf32>
    %14 = math.erf %13 : vector<16x128xf32>
    %cst_2 = arith.constant 1.000000e+00 : f32
    %15 = vector.broadcast %cst_2 : f32 to vector<16x128xf32>
    %16 = arith.addf %15, %14 : vector<16x128xf32>
    %cst_3 = arith.constant 5.000000e-01 : f32
    %17 = vector.broadcast %cst_3 : f32 to vector<16x128xf32>
    %18 = arith.mulf %17, %16 : vector<16x128xf32>
    %19 = arith.mulf %0, %18 : vector<16x128xf32>
    %c0_4 = arith.constant 0 : index
    %c0_5 = arith.constant 0 : index
    %20 = vector.load %arg2[%c0_4, %c0_5] : memref<16x128xf32, #tpu.memory_space<vmem>>, vector<16x128xf32>
    tpu.vector_store %arg2[%c0_4, %c0_5], %19 {strides = array<i32>} : memref<16x128xf32, #tpu.memory_space<vmem>>, vector<16x128xf32>,
    return
  }
  func.func @transform_0(%arg0: i32) -> (i32, i32) {
    %c0_i32 = arith.constant 0 : i32
    %c0_i32_0 = arith.constant 0 : i32
    return %arg0, %c0_i32 : i32, i32
  }
  func.func @transform_1(%arg0: i32) -> (i32, i32) {
    %c0_i32 = arith.constant 0 : i32
    %c0_i32_0 = arith.constant 0 : i32
    return %arg0, %c0_i32 : i32, i32
  }
}

</mosaic_0001>

<bundles_post_ra>
// kernel: tpu_custom_call.1
= control target key start
LH: loop header
LB: loop body
LE: loop exit
PB: predicated region body
PF: predicated region fallthrough
CT: control target
= control target key end

     0   :  { %6 = vsyncpa [#allocation3], 0  ;;  %s284_s0 = inlined_call_operand.hbm [shape: f32[16,128], index: 0, kind: input, shape index: {}]   ;;  %s285_s1 = inlined_call_operand.hbm [shape: f32[16,128], index: 1, kind: output, shape index: {}]  }
   0x1   :  { %7 = vsyncpa [#allocation4], 0  ;;  %s12_s8 = sshll.u32 %s284_s0, 4  ;;  %s236_s9 = smov [#allocation2]   ;;  %s13_s8 = int_to_ptr.hbm [resolvable:$true] %s12_s8 }
   0x2   :  { %s14_s10 = sshll.u32 %s236_s9, 4  ;;  %s237_s11 = smov 128   ;;  %s15_s10 = int_to_ptr.vmem [resolvable:$true] %s14_s10 }
   0x3   :  { %s238_s12 = smov 8  }
   0x4   :  { %20 = dma.hbm_to_vmem [thread:$0]  %s13_s8, 256, %s15_s10, [#allocation3], %s237_s11, %s237_s11, %s238_s12  }
   0x5   :  { %232 = dma.done.wait [#allocation3], 256  }
   0x6   :  { %233 = vsyncadd [#allocation3], 4294967040  ;;  %v256_v0 = vld [vmem:[#allocation2] sm:$0xff]  ;;  %v258_v1 = vld [vmem:[#allocation2 + $0x8] sm:$0xff]  ;;  %s239_s0 = smov [#allocation5]   ;;  %s157_s16 = sshll.u32 %s285_s1, 4  ;;  %s158_s16 = int_to_ptr.hbm [resolvable:$true] %s157_s16 }
   0x7   :  { %v27_v2 = vand.u32 2147483647, %v256_v0  ;;  %v28_v3 = vand.u32 2147483647, %v258_v1  ;;  %v51_v15 = vand.u32 2147483648, %v256_v0  ;;  %v52_v18 = vand.u32 2147483648, %v258_v1 }
   0x8   :  { %s155_s13 = sshll.u32 %s239_s0, 4  ;;  %s156_s13 = int_to_ptr.vmem [resolvable:$true] %s155_s13 }
   0x9   :  { %v29_v4 = vadd.f32 1.0, %v27_v2  ;;  %v32_v5 = vmul.f32 -0.5, %v27_v2  ;;  %v38_v6 = vadd.f32 1.0, %v28_v3  ;;  %v41_v7 = vmul.f32 -0.5, %v28_v3 }
   0xa   :  { %vm36_vm0 = vcmp.lt.f32.partialorder %v27_v2, 0.0004427343  ;;  %vm45_vm1 = vcmp.lt.f32.partialorder %v28_v3, 0.0004427343 }
   0xb   :  { %176 = vlog2.f32 %v29_v4  ;;  %v33_v8 = vadd.f32 1.0, %v32_v5  ;;  %v42_v9 = vadd.f32 1.0, %v41_v7 }
   0xc   :  { %178 = vlog2.f32 %v38_v6 }
   0xd   :  { %v34_v10 = vmul.f32 %v33_v8, %v27_v2  ;;  %v43_v12 = vmul.f32 %v42_v9, %v28_v3 }
  0x11   :  { %v177_v11 = vpop.eup %176 }
  0x12   :  { %v179_v13 = vpop.eup %178  ;;  %v31_v14 = vmul.f32 0.6931472, %v177_v11 }
  0x13   :  { %v40_v16 = vmul.f32 0.6931472, %v179_v13 }
  0x14   :  { %v37_v17 = vsel %vm36_vm0, %v34_v10, %v31_v14 }
  0x15   :  { %v47_v19 = vmul.f32 0.1, %v37_v17  ;;  %v46_v20 = vsel %vm45_vm1, %v43_v12, %v40_v16 }
  0x16   :  { %v48_v21 = vmul.f32 0.1, %v46_v20 }
  0x17   :  { %v55_v22 = vor.u32 %v51_v15, %v47_v19 }
  0x18   :  { %v56_v23 = vor.u32 %v52_v18, %v48_v21 }
  0x19   :  { %v59_v24 = vadd.f32 %v55_v22, %v256_v0 }
  0x1a   :  { %v60_v25 = vadd.f32 %v56_v23, %v258_v1 }
  0x1b   :  { %v266_v26 = vmul.f32 0.70710677, %v59_v24 }
  0x1c   :  { %v268_v27 = vmul.f32 0.70710677, %v60_v25 }
  0x1d   :  { %v63_v28 = vmul.f32 %v266_v26, %v266_v26 }
  0x1e   :  { %v103_v29 = vmul.f32 %v268_v27, %v268_v27 }
  0x1f   :  { %v64_v30 = vmin.f32 %v63_v28, 16.0 }
  0x20   :  { %v104_v31 = vmin.f32 %v103_v29, 16.0 }
  0x21   :  { %v65_v32 = vmul.f32 2.1237322e-06, %v64_v30  ;;  %v76_v33 = vmul.f32 3.8918573e-05, %v64_v30 }
  0x22   :  { %v105_v34 = vmul.f32 2.1237322e-06, %v104_v31  ;;  %v116_v35 = vmul.f32 3.8918573e-05, %v104_v31 }
  0x23   :  { %v66_v36 = vadd.f32 0.00028619796, %v65_v32  ;;  %v77_v37 = vadd.f32 0.001143296, %v76_v33 }
  0x24   :  { %v106_v38 = vadd.f32 0.00028619796, %v105_v34  ;;  %v117_v39 = vadd.f32 0.001143296, %v116_v35 }
  0x25   :  { %v67_v40 = vmul.f32 %v66_v36, %v64_v30  ;;  %v78_v41 = vmul.f32 %v77_v37, %v64_v30 }
  0x26   :  { %v107_v42 = vmul.f32 %v106_v38, %v104_v31  ;;  %v118_v43 = vmul.f32 %v117_v39, %v104_v31 }
  0x27   :  { %v68_v44 = vadd.f32 0.0036580483, %v67_v40  ;;  %v79_v45 = vadd.f32 0.014752088, %v78_v41 }
  0x28   :  { %v108_v46 = vadd.f32 0.0036580483, %v107_v42  ;;  %v119_v47 = vadd.f32 0.014752088, %v118_v43 }
  0x29   :  { %v69_v48 = vmul.f32 %v68_v44, %v64_v30  ;;  %v80_v49 = vmul.f32 %v79_v45, %v64_v30 }
  0x2a   :  { %v109_v50 = vmul.f32 %v108_v46, %v104_v31  ;;  %v120_v51 = vmul.f32 %v119_v47, %v104_v31 }
  0x2b   :  { %v81_v52 = vadd.f32 0.112945676, %v80_v49  ;;  %v70_v53 = vadd.f32 0.05243302, %v69_v48 }
  0x2c   :  { %v121_v54 = vadd.f32 0.112945676, %v120_v51  ;;  %v110_v56 = vadd.f32 0.05243302, %v109_v50 }
  0x2d   :  { %v82_v55 = vmul.f32 %v81_v52, %v64_v30  ;;  %v71_v59 = vmul.f32 %v70_v53, %v64_v30 }
  0x2e   :  { %v122_v57 = vmul.f32 %v121_v54, %v104_v31  ;;  %v111_v62 = vmul.f32 %v110_v56, %v104_v31 }
  0x2f   :  { %v83_v58 = vadd.f32 0.4994258, %v82_v55  ;;  %v72_v3 = vadd.f32 0.18741608, %v71_v59 }
  0x30   :  { %v123_v60 = vadd.f32 0.4994258, %v122_v57  ;;  %v112_v5 = vadd.f32 0.18741608, %v111_v62 }
  0x31   :  { %v84_v61 = vmul.f32 %v83_v58, %v64_v30  ;;  %v73_v6 = vmul.f32 %v72_v3, %v64_v30 }
  0x32   :  { %v124_v63 = vmul.f32 %v123_v60, %v104_v31  ;;  %v113_v7 = vmul.f32 %v112_v5, %v104_v31 }
  0x33   :  { %v85_v2 = vadd.f32 1.0, %v84_v61  ;;  %v74_v10 = vadd.f32 1.1283791, %v73_v6 }
  0x34   :  { %v125_v4 = vadd.f32 1.0, %v124_v63  ;;  %v114_v13 = vadd.f32 1.1283791, %v113_v7 }
  0x35   :  { %180 = vrcp.f32 %v85_v2  ;;  %vm91_vm2 = vweird.f32 %v85_v2  ;;  %v97_v12 = vand.u32 2147483648, %v85_v2  ;;  %v95_v16 = vand.u32 2147483647, %v85_v2 }
  0x36   :  { %182 = vrcp.f32 %v125_v4  ;;  %v137_v17 = vand.u32 2147483648, %v125_v4  ;;  %vm131_vm4 = vweird.f32 %v125_v4  ;;  %v135_v19 = vand.u32 2147483647, %v125_v4 }
  0x37   :  { %v98_v21 = vor.u32 1.1754944e-38, %v97_v12  ;;  %v75_v23 = vmul.f32 %v74_v10, %v266_v26  ;;  %vm96_vm7 = vcmp.eq.f32.partialorder %v95_v16, 8.507059e+37  ;;  %v115_v28 = vmul.f32 %v114_v13, %v268_v27 }
  0x38   :  { %v138_v25 = vor.u32 1.1754944e-38, %v137_v17  ;;  %vm136_vm9 = vcmp.eq.f32.partialorder %v135_v19, 8.507059e+37 }
  0x3b   :  { %v181_v8 = vpop.eup %180 }
  0x3c   :  { %v183_v9 = vpop.eup %182  ;;  %v87_v11 = vmul.f32 %v181_v8, %v85_v2  ;;  %vm92_vm3 = vweird.f32 %v181_v8 }
  0x3d   :  { %v127_v14 = vmul.f32 %v183_v9, %v125_v4  ;;  %vm132_vm5 = vweird.f32 %v183_v9  ;;  %vm93_vm6 = vmor %vm91_vm2, %vm92_vm3 }
  0x3e   :  { %v88_v15 = vsub.f32 1.0, %v87_v11  ;;  %vm133_vm8 = vmor %vm131_vm4, %vm132_vm5 }
  0x3f   :  { %v128_v18 = vsub.f32 1.0, %v127_v14 }
  0x40   :  { %v89_v20 = vmul.f32 %v181_v8, %v88_v15 }
  0x41   :  { %v129_v22 = vmul.f32 %v183_v9, %v128_v18 }
  0x42   :  { %v90_v24 = vadd.f32 %v181_v8, %v89_v20 }
  0x43   :  { %v130_v29 = vadd.f32 %v183_v9, %v129_v22 }
  0x44   :  { %v94_v30 = vsel %vm93_vm6, %v181_v8, %v90_v24 }
  0x45   :  { %v99_v31 = vsel %vm96_vm7, %v98_v21, %v94_v30  ;;  %v134_v32 = vsel %vm133_vm8, %v183_v9, %v130_v29 }
  0x46   :  { %v100_v33 = vmul.f32 %v99_v31, %v75_v23  ;;  %v139_v34 = vsel %vm136_vm9, %v138_v25, %v134_v32 }
  0x47   :  { %v140_v35 = vmul.f32 %v139_v34, %v115_v28 }
  0x48   :  { %v170_v36 = vclamps-f32 %v100_v33, 1.0 }
  0x49   :  { %v171_v37 = vclamps-f32 %v140_v35, 1.0 }
  0x4a   :  { %v143_v38 = vadd.f32 1.0, %v170_v36 }
  0x4b   :  { %v144_v39 = vadd.f32 1.0, %v171_v37 }
  0x4c   :  { %v145_v40 = vmul.f32 0.5, %v143_v38 }
  0x4d   :  { %v146_v26 = vmul.f32 0.5, %v144_v39 }
  0x4e   :  { %v147_v27 = vmul.f32 %v145_v40, %v256_v0 }
  0x4f   :  { %v148_v41 = vmul.f32 %v146_v26, %v258_v1 }
  0x50   :  { %149 = vst [vmem:[#allocation5] sm:$0xff] %v147_v27 }
  0x51   :  { %150 = vst [vmem:[#allocation5 + $0x8] sm:$0xff] %v148_v41 }
  0x52   :  { %163 = dma.vmem_to_hbm [thread:$0]  %s156_s13, 256, %s158_s16, [#allocation4], %s237_s11, %s237_s11, %s238_s12  }
  0x53   :  { %234 = dma.done.wait [#allocation4], 256  }
  0x54   :  { %235 = vsyncadd [#allocation4], 4294967040 }
  0x55   :  { %168 = vsyncpa [#allocation3], 1 }
  0x56   :  { %169 = vsyncpa [#allocation4], 1 }

</bundles_post_ra>
